<compile_context>
chip_gen: v7x
topology: tpu7x:2x2x1
jax: 0.10.0
libtpu: 0.0.40
codegen_flags: <defaults>
</compile_context>

<pallas_src>
import functools
import math

import jax
import jax.numpy as jnp
import numpy as np
from jax import lax
from jax.experimental import pallas as pl
from jax.experimental.pallas import tpu as pltpu

_INV_SQRT2 = np.float32(1.0 / math.sqrt(2.0))
_LANE = 128


def _gelu_exact(x):
    # PyTorch default GELU (approximate='none'): 0.5 * x * (1 + erf(x / sqrt(2)))
    return 0.5 * x * (1.0 + lax.erf(x * _INV_SQRT2))


# ----------------------------- kernel ---------------------------------------


def upscale_kernel(x_ref, w1_ref, b1_ref, bn_s_ref, bn_b_ref, w2_ref, b2_ref, o_ref,
                   *, src_counts, compute_dtype):
    """One batch element per program.

    x_ref : (N, Cin)        original (un-upsampled) rows, source dtype
    w1_ref: (3, Cin, H)     conv1 taps (0: left neighbor, 1: center, 2: right)
    b1_ref: (1, H)
    bn_s_ref, bn_b_ref: (1, H)   folded eval-mode BatchNorm affine
    w2_ref: (3, H, Cout_pad)
    b2_ref: (1, Cout_pad)
    o_ref : (M, Cout_pad)
    src_counts: static tuple; src_counts[i] = number of upsampled rows that take
                source row i (nearest interpolation).  None -> x_ref is already
                upsampled to M rows.
    """
    cdt = compute_dtype
    x = x_ref[...].astype(cdt)                          # (N, Cin)

    # ---- nearest-neighbor upsample, entirely in VMEM ------------------------
    if src_counts is None:
        x_up = x                                        # already (M, Cin)
    else:
        pieces = []
        for i, cnt in enumerate(src_counts):            # static unroll, N is small
            if cnt == 0:
                continue
            row = x[i:i + 1, :]
            pieces.append(row if cnt == 1
                          else jnp.broadcast_to(row, (cnt, row.shape[1])))
        x_up = pieces[0] if len(pieces) == 1 else jnp.concatenate(pieces, axis=0)

    def conv3(inp, w_ref, b_ref):
        # Conv1d(kernel=3, stride=1, pad=1), channel-last:
        #   y[t] = x[t-1] @ W0 + x[t] @ W1 + x[t+1] @ W2 + b   (zero-padded ends)
        # NOTE: shifts use zero-row concatenates (proven lowering at these shapes);
        # pltpu.roll(axis=0) + an iota edge mask is the XLU-slot alternative and the
        # shift cost here is tiny next to the MXU matmuls.
        zero = jnp.zeros((1, inp.shape[1]), inp.dtype)
        left = jnp.concatenate([zero, inp[:-1, :]], axis=0)
        right = jnp.concatenate([inp[1:, :], zero], axis=0)
        wl = w_ref[0].astype(inp.dtype)
        wc = w_ref[1].astype(inp.dtype)
        wr = w_ref[2].astype(inp.dtype)
        y = jnp.dot(left, wl, preferred_element_type=jnp.float32)
        y = y + jnp.dot(inp, wc, preferred_element_type=jnp.float32)
        y = y + jnp.dot(right, wr, preferred_element_type=jnp.float32)
        return y + b_ref[...].astype(jnp.float32)

    h = conv3(x_up, w1_ref, b1_ref)                     # (M, H), f32
    h = _gelu_exact(h)                                  # exact-erf GELU (EUP)
    h = h * bn_s_ref[...] + bn_b_ref[...]               # BatchNorm1d (eval, folded)
    y = conv3(h.astype(cdt), w2_ref, b2_ref)            # (M, Cout_pad), f32
    o_ref[...] = y.astype(o_ref.dtype)                  # lane-dense unmasked stores


# ----------------------------- wrapper ---------------------------------------


def upscale_forward(x, upscale_size, params, *, compute_dtype=jnp.float32,
                    lane_pad_output=True, max_unrolled_src_rows=128):
    """x: (B, N, Cin) -> (B, upscale_size, Cout).  Matches Upscale.forward (eval mode)."""
    B, N, Cin = x.shape
    M = int(upscale_size)
    w1, b1, bn_scale, bn_bias, w2, b2 = params
    H = w1.shape[-1]
    Cout = w2.shape[-1]

    # Nearest-neighbor source index per upsampled row (PyTorch: floor(m * N / M)).
    idx = np.arange(M, dtype=np.int64) * N // M         # int64: no overflow for big M*N

    if N <= max_unrolled_src_rows:
        # Upsample inside the kernel: DMA only the (N, Cin) source block per batch.
        x_in = x
        n_rows_in = N
        src_counts = tuple(int(c) for c in np.bincount(idx, minlength=N))
    else:
        # TODO(synk): for very long sources, gather in the wrapper (source dtype, no
        # f32 materialization); an in-kernel version would need a DMA/take gather.
        x_in = jnp.take(x, jnp.asarray(idx, dtype=jnp.int32), axis=1)
        n_rows_in = M
        src_counts = None

    # Lane-dense output: pad conv2's output channels to a multiple of 128 so the
    # (M, Cout) stores are unmasked full-lane vst's; the wrapper slices them back.
    Cout_pad = Cout
    if lane_pad_output and Cout % _LANE != 0:
        Cout_pad = ((Cout + _LANE - 1) // _LANE) * _LANE
        pad = Cout_pad - Cout
        w2 = jnp.pad(w2, ((0, 0), (0, 0), (0, pad)))
        b2 = jnp.pad(b2, ((0, 0), (0, pad)))

    kernel = functools.partial(upscale_kernel, src_counts=src_counts,
                               compute_dtype=compute_dtype)

    # Advisory cost estimate (two k=3 convs over M rows per batch element).
    flops = 2 * B * M * 3 * (Cin * H + H * Cout_pad)
    param_list = (w1, b1, bn_scale, bn_bias, w2, b2)
    param_bytes = sum(int(p.size) * p.dtype.itemsize for p in param_list)
    bytes_accessed = (int(x_in.size) * x_in.dtype.itemsize + param_bytes
                      + B * M * Cout_pad * 4)
    cost = pl.CostEstimate(flops=flops, transcendentals=B * M * H,
                           bytes_accessed=bytes_accessed)

    # VMEM budget: double-buffered x/out blocks + parameters + in-kernel temporaries.
    # TODO(synk): tile the M axis (with a 1-row halo) when M * max(Cin, H, Cout_pad)
    # grows toward v7x's 64 MiB VMEM; full-M-per-batch is fine at these sizes.
    est = (2 * n_rows_in * Cin * x_in.dtype.itemsize
           + 2 * M * Cout_pad * 4
           + 2 * param_bytes
           + 10 * M * max(Cin, H, Cout_pad) * 4)
    vmem_limit = int(min(max(2 * est, 32 * 1024 * 1024), 64 * 1024 * 1024))

    out = pl.pallas_call(
        kernel,
        out_shape=jax.ShapeDtypeStruct((B, M, Cout_pad), jnp.float32),
        grid_spec=pltpu.PrefetchScalarGridSpec(
            num_scalar_prefetch=0,
            grid=(B,),
            in_specs=[
                pl.BlockSpec((None, n_rows_in, Cin), lambda b: (b, 0, 0)),
                pl.BlockSpec((3, Cin, H), lambda b: (0, 0, 0)),
                pl.BlockSpec((1, H), lambda b: (0, 0)),
                pl.BlockSpec((1, H), lambda b: (0, 0)),
                pl.BlockSpec((1, H), lambda b: (0, 0)),
                pl.BlockSpec((3, H, Cout_pad), lambda b: (0, 0, 0)),
                pl.BlockSpec((1, Cout_pad), lambda b: (0, 0)),
            ],
            out_specs=pl.BlockSpec((None, M, Cout_pad), lambda b: (b, 0, 0)),
        ),
        compiler_params=pltpu.CompilerParams(
            dimension_semantics=("parallel",),
            vmem_limit_bytes=vmem_limit,
        ),
        cost_estimate=cost,
    )(x_in, w1, b1, bn_scale, bn_bias, w2, b2)

    return out if Cout_pad == Cout else out[..., :Cout]


# ----------------------------- reference (pure JAX) ---------------------------


def upscale_reference(x, upscale_size, params):
    B, N, Cin = x.shape
    M = int(upscale_size)
    w1, b1, bn_scale, bn_bias, w2, b2 = params
    idx = np.arange(M, dtype=np.int64) * N // M
    xu = x[:, idx, :].astype(jnp.float32)               # (B, M, Cin)

    def conv3(inp, w, b):                               # inp: (B, M, C)
        zero = jnp.zeros((inp.shape[0], 1, inp.shape[2]), jnp.float32)
        left = jnp.concatenate([zero, inp[:, :-1, :]], axis=1)
        right = jnp.concatenate([inp[:, 1:, :], zero], axis=1)
        return (jnp.einsum("bmc,ch->bmh", left, w[0])
                + jnp.einsum("bmc,ch->bmh", inp, w[1])
                + jnp.einsum("bmc,ch->bmh", right, w[2]) + b)

    h = conv3(xu, w1, b1)
    h = 0.5 * h * (1.0 + lax.erf(h / jnp.sqrt(2.0)))
    h = h * bn_scale + bn_bias
    return conv3(h, w2, b2)


# ----------------------------- params / main ----------------------------------


def make_params(key, in_channels, out_channels, h_dim):
    k1, k2, k3, k4, k5, k6, k7, k8 = jax.random.split(key, 8)
    # Conv weights stored as (k, Cin, Cout) = PyTorch (Cout, Cin, k) transposed.
    w1 = 0.1 * jax.random.normal(k1, (3, in_channels, h_dim), jnp.float32)
    b1 = 0.1 * jax.random.normal(k2, (1, h_dim), jnp.float32)
    w2 = 0.1 * jax.random.normal(k3, (3, h_dim, out_channels), jnp.float32)
    b2 = 0.1 * jax.random.normal(k4, (1, out_channels), jnp.float32)
    # BatchNorm1d(h_dim) eval-mode parameters, folded into affine scale/bias.
    gamma = 1.0 + 0.1 * jax.random.normal(k5, (1, h_dim), jnp.float32)
    beta = 0.1 * jax.random.normal(k6, (1, h_dim), jnp.float32)
    running_mean = 0.1 * jax.random.normal(k7, (1, h_dim), jnp.float32)
    running_var = jnp.abs(1.0 + 0.1 * jax.random.normal(k8, (1, h_dim), jnp.float32))
    eps = 1e-5
    bn_scale = gamma / jnp.sqrt(running_var + eps)
    bn_bias = beta - running_mean * bn_scale
    return (w1, b1, bn_scale, bn_bias, w2, b2)


if __name__ == "__main__":
    B, N, IN_CH, H_DIM, OUT_CH = 2, 8, 4, 32, 4
    UPSCALE = 16

    key = jax.random.PRNGKey(0)
    kx, kp = jax.random.split(key)
    x = jax.random.normal(kx, (B, N, IN_CH), jnp.float32)   # (b, n, d)
    params = make_params(kp, IN_CH, OUT_CH, H_DIM)

    # Uniform upscale (M % N == 0).
    out = jax.block_until_ready(upscale_forward(x, UPSCALE, params))
    ref = jax.block_until_ready(upscale_reference(x, UPSCALE, params))
    assert out.shape == (B, UPSCALE, OUT_CH), out.shape
    np.testing.assert_allclose(np.asarray(out), np.asarray(ref), atol=2e-4, rtol=2e-4)

    # Non-uniform nearest upscale (M % N != 0) exercises the bincount path.
    out2 = jax.block_until_ready(upscale_forward(x, 20, params))
    ref2 = jax.block_until_ready(upscale_reference(x, 20, params))
    assert out2.shape == (B, 20, OUT_CH), out2.shape
    np.testing.assert_allclose(np.asarray(out2), np.asarray(ref2), atol=2e-4, rtol=2e-4)

    print("KERNEL_OK")
</pallas_src>

<mosaic_0001>
module attributes {stable_mosaic.version = 11 : i64} {
  func.func @upscale_kernel(%arg0: i32, %arg1: memref<1x8x4xf32, #tpu.memory_space<vmem>>, %arg2: memref<3x4x32xf32, #tpu.memory_space<vmem>>, %arg3: memref<1x32xf32, #tpu.memory_space<vmem>>, %arg4: memref<1x32xf32, #tpu.memory_space<vmem>>, %arg5: memref<1x32xf32, #tpu.memory_space<vmem>>, %arg6: memref<3x32x128xf32, #tpu.memory_space<vmem>>, %arg7: memref<1x128xf32, #tpu.memory_space<vmem>>, %arg8: memref<1x16x128xf32, #tpu.memory_space<vmem>>) attributes {dimension_semantics = [#tpu.dimension_semantics<parallel>], iteration_bounds = array<i64: 2>, scalar_prefetch = 0 : i64, scratch_operands = 0 : i64, tpu.core_type = #tpu.core_type<tc>, window_params = [{transform_indices = @transform_0, window_bounds = array<i64: 1, 8, 4>}, {pipeline_mode = #tpu.pipeline_mode<synchronous>, transform_indices = @transform_1, window_bounds = array<i64: 3, 4, 32>}, {pipeline_mode = #tpu.pipeline_mode<synchronous>, transform_indices = @transform_2, window_bounds = array<i64: 1, 32>}, {pipeline_mode = #tpu.pipeline_mode<synchronous>, transform_indices = @transform_3, window_bounds = array<i64: 1, 32>}, {pipeline_mode = #tpu.pipeline_mode<synchronous>, transform_indices = @transform_4, window_bounds = array<i64: 1, 32>}, {pipeline_mode = #tpu.pipeline_mode<synchronous>, transform_indices = @transform_5, window_bounds = array<i64: 3, 32, 128>}, {pipeline_mode = #tpu.pipeline_mode<synchronous>, transform_indices = @transform_6, window_bounds = array<i64: 1, 128>}, {transform_indices = @transform_7, window_bounds = array<i64: 1, 16, 128>}]} {
    %c0 = arith.constant 0 : index
    %c0_0 = arith.constant 0 : index
    %c0_1 = arith.constant 0 : index
    %0 = vector.load %arg1[%c0, %c0_0, %c0_1] : memref<1x8x4xf32, #tpu.memory_space<vmem>>, vector<1x8x4xf32>
    %1 = vector.shape_cast %0 : vector<1x8x4xf32> to vector<8x4xf32>
    %2 = vector.extract_strided_slice %1 {offsets = [0, 0], sizes = [1, 4], strides = [1, 1]} : vector<8x4xf32> to vector<1x4xf32>
    %3 = vector.shape_cast %2 : vector<1x4xf32> to vector<1x4xf32>
    %4 = vector.broadcast %3 : vector<1x4xf32> to vector<2x4xf32>
    %5 = vector.extract_strided_slice %1 {offsets = [1, 0], sizes = [1, 4], strides = [1, 1]} : vector<8x4xf32> to vector<1x4xf32>
    %6 = vector.shape_cast %5 : vector<1x4xf32> to vector<1x4xf32>
    %7 = vector.broadcast %6 : vector<1x4xf32> to vector<2x4xf32>
    %8 = vector.extract_strided_slice %1 {offsets = [2, 0], sizes = [1, 4], strides = [1, 1]} : vector<8x4xf32> to vector<1x4xf32>
    %9 = vector.shape_cast %8 : vector<1x4xf32> to vector<1x4xf32>
    %10 = vector.broadcast %9 : vector<1x4xf32> to vector<2x4xf32>
    %11 = vector.extract_strided_slice %1 {offsets = [3, 0], sizes = [1, 4], strides = [1, 1]} : vector<8x4xf32> to vector<1x4xf32>
    %12 = vector.shape_cast %11 : vector<1x4xf32> to vector<1x4xf32>
    %13 = vector.broadcast %12 : vector<1x4xf32> to vector<2x4xf32>
    %14 = vector.extract_strided_slice %1 {offsets = [4, 0], sizes = [1, 4], strides = [1, 1]} : vector<8x4xf32> to vector<1x4xf32>
    %15 = vector.shape_cast %14 : vector<1x4xf32> to vector<1x4xf32>
    %16 = vector.broadcast %15 : vector<1x4xf32> to vector<2x4xf32>
    %17 = vector.extract_strided_slice %1 {offsets = [5, 0], sizes = [1, 4], strides = [1, 1]} : vector<8x4xf32> to vector<1x4xf32>
    %18 = vector.shape_cast %17 : vector<1x4xf32> to vector<1x4xf32>
    %19 = vector.broadcast %18 : vector<1x4xf32> to vector<2x4xf32>
    %20 = vector.extract_strided_slice %1 {offsets = [6, 0], sizes = [1, 4], strides = [1, 1]} : vector<8x4xf32> to vector<1x4xf32>
    %21 = vector.shape_cast %20 : vector<1x4xf32> to vector<1x4xf32>
    %22 = vector.broadcast %21 : vector<1x4xf32> to vector<2x4xf32>
    %23 = vector.extract_strided_slice %1 {offsets = [7, 0], sizes = [1, 4], strides = [1, 1]} : vector<8x4xf32> to vector<1x4xf32>
    %24 = vector.shape_cast %23 : vector<1x4xf32> to vector<1x4xf32>
    %25 = vector.broadcast %24 : vector<1x4xf32> to vector<2x4xf32>
    %26 = tpu.concatenate %4, %7, %10, %13, %16, %19, %22, %25 in 0 : vector<2x4xf32>, vector<2x4xf32>, vector<2x4xf32>, vector<2x4xf32>, vector<2x4xf32>, vector<2x4xf32>, vector<2x4xf32>, vector<2x4xf32> -> vector<16x4xf32>
    %cst = arith.constant 0.000000e+00 : f32
    %27 = vector.broadcast %cst : f32 to vector<1x4xf32>
    %28 = vector.extract_strided_slice %26 {offsets = [0, 0], sizes = [15, 4], strides = [1, 1]} : vector<16x4xf32> to vector<15x4xf32>
    %29 = tpu.concatenate %27, %28 in 0 : vector<1x4xf32>, vector<15x4xf32> -> vector<16x4xf32>
    %30 = vector.extract_strided_slice %26 {offsets = [1, 0], sizes = [15, 4], strides = [1, 1]} : vector<16x4xf32> to vector<15x4xf32>
    %31 = tpu.concatenate %30, %27 in 0 : vector<15x4xf32>, vector<1x4xf32> -> vector<16x4xf32>
    %c0_2 = arith.constant 0 : index
    %c0_3 = arith.constant 0 : index
    %c0_4 = arith.constant 0 : index
    %32 = vector.load %arg2[%c0_2, %c0_3, %c0_4] : memref<3x4x32xf32, #tpu.memory_space<vmem>>, vector<1x4x32xf32>
    %33 = vector.shape_cast %32 : vector<1x4x32xf32> to vector<4x32xf32>
    %c1 = arith.constant 1 : index
    %c0_5 = arith.constant 0 : index
    %c0_6 = arith.constant 0 : index
    %34 = vector.load %arg2[%c1, %c0_5, %c0_6] : memref<3x4x32xf32, #tpu.memory_space<vmem>>, vector<1x4x32xf32>
    %35 = vector.shape_cast %34 : vector<1x4x32xf32> to vector<4x32xf32>
    %c2 = arith.constant 2 : index
    %c0_7 = arith.constant 0 : index
    %c0_8 = arith.constant 0 : index
    %36 = vector.load %arg2[%c2, %c0_7, %c0_8] : memref<3x4x32xf32, #tpu.memory_space<vmem>>, vector<1x4x32xf32>
    %37 = vector.shape_cast %36 : vector<1x4x32xf32> to vector<4x32xf32>
    %cst_9 = arith.constant dense<0.000000e+00> : vector<16x32xf32>
    %38 = tpu.matmul %29, %33, %cst_9 {dimension_numbers = #tpu.dot_dimension_numbers<[1], [0], [0], [1], [0, 0, 1, 1], [], []>} : vector<16x4xf32>, vector<4x32xf32>, vector<16x32xf32> -> vector<16x32xf32>
    %cst_10 = arith.constant dense<0.000000e+00> : vector<16x32xf32>
    %39 = tpu.matmul %26, %35, %cst_10 {dimension_numbers = #tpu.dot_dimension_numbers<[1], [0], [0], [1], [0, 0, 1, 1], [], []>} : vector<16x4xf32>, vector<4x32xf32>, vector<16x32xf32> -> vector<16x32xf32>
    %40 = arith.addf %38, %39 : vector<16x32xf32>
    %cst_11 = arith.constant dense<0.000000e+00> : vector<16x32xf32>
    %41 = tpu.matmul %31, %37, %cst_11 {dimension_numbers = #tpu.dot_dimension_numbers<[1], [0], [0], [1], [0, 0, 1, 1], [], []>} : vector<16x4xf32>, vector<4x32xf32>, vector<16x32xf32> -> vector<16x32xf32>
    %42 = arith.addf %40, %41 : vector<16x32xf32>
    %c0_12 = arith.constant 0 : index
    %c0_13 = arith.constant 0 : index
    %43 = vector.load %arg3[%c0_12, %c0_13] : memref<1x32xf32, #tpu.memory_space<vmem>>, vector<1x32xf32>
    %44 = vector.broadcast %43 : vector<1x32xf32> to vector<16x32xf32>
    %45 = arith.addf %42, %44 : vector<16x32xf32>
    %cst_14 = arith.constant 5.000000e-01 : f32
    %46 = vector.broadcast %cst_14 : f32 to vector<16x32xf32>
    %47 = arith.mulf %46, %45 : vector<16x32xf32>
    %cst_15 = arith.constant 0.707106769 : f32
    %48 = vector.broadcast %cst_15 : f32 to vector<16x32xf32>
    %49 = arith.mulf %45, %48 : vector<16x32xf32>
    %50 = math.erf %49 : vector<16x32xf32>
    %cst_16 = arith.constant 1.000000e+00 : f32
    %51 = vector.broadcast %cst_16 : f32 to vector<16x32xf32>
    %52 = arith.addf %51, %50 : vector<16x32xf32>
    %53 = arith.mulf %47, %52 : vector<16x32xf32>
    %c0_17 = arith.constant 0 : index
    %c0_18 = arith.constant 0 : index
    %54 = vector.load %arg4[%c0_17, %c0_18] : memref<1x32xf32, #tpu.memory_space<vmem>>, vector<1x32xf32>
    %55 = vector.broadcast %54 : vector<1x32xf32> to vector<16x32xf32>
    %56 = arith.mulf %53, %55 : vector<16x32xf32>
    %c0_19 = arith.constant 0 : index
    %c0_20 = arith.constant 0 : index
    %57 = vector.load %arg5[%c0_19, %c0_20] : memref<1x32xf32, #tpu.memory_space<vmem>>, vector<1x32xf32>
    %58 = vector.broadcast %57 : vector<1x32xf32> to vector<16x32xf32>
    %59 = arith.addf %56, %58 : vector<16x32xf32>
    %cst_21 = arith.constant 0.000000e+00 : f32
    %60 = vector.broadcast %cst_21 : f32 to vector<1x32xf32>
    %61 = vector.extract_strided_slice %59 {offsets = [0, 0], sizes = [15, 32], strides = [1, 1]} : vector<16x32xf32> to vector<15x32xf32>
    %62 = tpu.concatenate %60, %61 in 0 : vector<1x32xf32>, vector<15x32xf32> -> vector<16x32xf32>
    %63 = vector.extract_strided_slice %59 {offsets = [1, 0], sizes = [15, 32], strides = [1, 1]} : vector<16x32xf32> to vector<15x32xf32>
    %64 = tpu.concatenate %63, %60 in 0 : vector<15x32xf32>, vector<1x32xf32> -> vector<16x32xf32>
    %c0_22 = arith.constant 0 : index
    %c0_23 = arith.constant 0 : index
    %c0_24 = arith.constant 0 : index
    %65 = vector.load %arg6[%c0_22, %c0_23, %c0_24] : memref<3x32x128xf32, #tpu.memory_space<vmem>>, vector<1x32x128xf32>
    %66 = vector.shape_cast %65 : vector<1x32x128xf32> to vector<32x128xf32>
    %c1_25 = arith.constant 1 : index
    %c0_26 = arith.constant 0 : index
    %c0_27 = arith.constant 0 : index
    %67 = vector.load %arg6[%c1_25, %c0_26, %c0_27] : memref<3x32x128xf32, #tpu.memory_space<vmem>>, vector<1x32x128xf32>
    %68 = vector.shape_cast %67 : vector<1x32x128xf32> to vector<32x128xf32>
    %c2_28 = arith.constant 2 : index
    %c0_29 = arith.constant 0 : index
    %c0_30 = arith.constant 0 : index
    %69 = vector.load %arg6[%c2_28, %c0_29, %c0_30] : memref<3x32x128xf32, #tpu.memory_space<vmem>>, vector<1x32x128xf32>
    %70 = vector.shape_cast %69 : vector<1x32x128xf32> to vector<32x128xf32>
    %cst_31 = arith.constant dense<0.000000e+00> : vector<16x128xf32>
    %71 = tpu.matmul %62, %66, %cst_31 {dimension_numbers = #tpu.dot_dimension_numbers<[1], [0], [0], [1], [0, 0, 1, 1], [], []>} : vector<16x32xf32>, vector<32x128xf32>, vector<16x128xf32> -> vector<16x128xf32>
    %cst_32 = arith.constant dense<0.000000e+00> : vector<16x128xf32>
    %72 = tpu.matmul %59, %68, %cst_32 {dimension_numbers = #tpu.dot_dimension_numbers<[1], [0], [0], [1], [0, 0, 1, 1], [], []>} : vector<16x32xf32>, vector<32x128xf32>, vector<16x128xf32> -> vector<16x128xf32>
    %73 = arith.addf %71, %72 : vector<16x128xf32>
    %cst_33 = arith.constant dense<0.000000e+00> : vector<16x128xf32>
    %74 = tpu.matmul %64, %70, %cst_33 {dimension_numbers = #tpu.dot_dimension_numbers<[1], [0], [0], [1], [0, 0, 1, 1], [], []>} : vector<16x32xf32>, vector<32x128xf32>, vector<16x128xf32> -> vector<16x128xf32>
    %75 = arith.addf %73, %74 : vector<16x128xf32>
    %c0_34 = arith.constant 0 : index
    %c0_35 = arith.constant 0 : index
    %76 = vector.load %arg7[%c0_34, %c0_35] : memref<1x128xf32, #tpu.memory_space<vmem>>, vector<1x128xf32>
    %77 = vector.broadcast %76 : vector<1x128xf32> to vector<16x128xf32>
    %78 = arith.addf %75, %77 : vector<16x128xf32>
    %c0_36 = arith.constant 0 : index
    %c0_37 = arith.constant 0 : index
    %c0_38 = arith.constant 0 : index
    %79 = vector.load %arg8[%c0_36, %c0_37, %c0_38] : memref<1x16x128xf32, #tpu.memory_space<vmem>>, vector<1x16x128xf32>
    %80 = vector.shape_cast %79 : vector<1x16x128xf32> to vector<16x128xf32>
    %81 = vector.shape_cast %78 : vector<16x128xf32> to vector<1x16x128xf32>
    tpu.vector_store %arg8[%c0_36, %c0_37, %c0_38], %81 {strides = array<i32>} : memref<1x16x128xf32, #tpu.memory_space<vmem>>, vector<1x16x128xf32>,
    return
  }
  func.func @transform_0(%arg0: i32) -> (i32, i32, i32) {
    %c0_i32 = arith.constant 0 : i32
    %c0_i32_0 = arith.constant 0 : i32
    %c0_i32_1 = arith.constant 0 : i32
    return %arg0, %c0_i32, %c0_i32_0 : i32, i32, i32
  }
  func.func @transform_1(%arg0: i32) -> (i32, i32, i32) {
    %c0_i32 = arith.constant 0 : i32
    %c0_i32_0 = arith.constant 0 : i32
    %c0_i32_1 = arith.constant 0 : i32
    %c0_i32_2 = arith.constant 0 : i32
    return %c0_i32, %c0_i32_0, %c0_i32_1 : i32, i32, i32
  }
  func.func @transform_2(%arg0: i32) -> (i32, i32) {
    %c0_i32 = arith.constant 0 : i32
    %c0_i32_0 = arith.constant 0 : i32
    %c0_i32_1 = arith.constant 0 : i32
    return %c0_i32, %c0_i32_0 : i32, i32
  }
  func.func @transform_3(%arg0: i32) -> (i32, i32) {
    %c0_i32 = arith.constant 0 : i32
    %c0_i32_0 = arith.constant 0 : i32
    %c0_i32_1 = arith.constant 0 : i32
    return %c0_i32, %c0_i32_0 : i32, i32
  }
  func.func @transform_4(%arg0: i32) -> (i32, i32) {
    %c0_i32 = arith.constant 0 : i32
    %c0_i32_0 = arith.constant 0 : i32
    %c0_i32_1 = arith.constant 0 : i32
    return %c0_i32, %c0_i32_0 : i32, i32
  }
  func.func @transform_5(%arg0: i32) -> (i32, i32, i32) {
    %c0_i32 = arith.constant 0 : i32
    %c0_i32_0 = arith.constant 0 : i32
    %c0_i32_1 = arith.constant 0 : i32
    %c0_i32_2 = arith.constant 0 : i32
    return %c0_i32, %c0_i32_0, %c0_i32_1 : i32, i32, i32
  }
  func.func @transform_6(%arg0: i32) -> (i32, i32) {
    %c0_i32 = arith.constant 0 : i32
    %c0_i32_0 = arith.constant 0 : i32
    %c0_i32_1 = arith.constant 0 : i32
    return %c0_i32, %c0_i32_0 : i32, i32
  }
  func.func @transform_7(%arg0: i32) -> (i32, i32, i32) {
    %c0_i32 = arith.constant 0 : i32
    %c0_i32_0 = arith.constant 0 : i32
    %c0_i32_1 = arith.constant 0 : i32
    return %arg0, %c0_i32, %c0_i32_0 : i32, i32, i32
  }
}

</mosaic_0001>

<bundles_post_ra>
// kernel: tpu_custom_call.1
= control target key start
LH: loop header
LB: loop body
LE: loop exit
PB: predicated region body
PF: predicated region fallthrough
CT: control target
= control target key end

     0   :  { %12 = vsyncpa [#allocation3], 0  ;;  %s1538_s0 = inlined_call_operand.vmem [shape: f32[2,8,4], index: 0, kind: input, shape index: {}]   ;;  %s1539_s1 = inlined_call_operand.vmem [shape: f32[3,4,32], index: 1, kind: input, shape index: {}]   ;;  %s1540_s2 = inlined_call_operand.vmem [shape: f32[1,32], index: 2, kind: input, shape index: {}]   ;;  %s1541_s3 = inlined_call_operand.vmem [shape: f32[1,32], index: 3, kind: input, shape index: {}]   ;;  %s1542_s4 = inlined_call_operand.vmem [shape: f32[1,32], index: 4, kind: input, shape index: {}]   ;;  %s1543_s5 = inlined_call_operand.hbm [shape: f32[3,32,128], index: 5, kind: input, shape index: {}]   ;;  %s1544_s6 = inlined_call_operand.vmem [shape: f32[1,128], index: 6, kind: input, shape index: {}]   ;;  %s1545_s7 = inlined_call_operand.hbm [shape: f32[2,16,128], index: 7, kind: output, shape index: {}]  }
   0x1   :  { %13 = vsyncpa [#allocation4], 0 }
   0x2   :  { %15 = vsyncpa [#allocation4 + $0x1], 0  ;;  %s1347_s24 = smov 0   ;;  %s1349_s25 = smov 0  }
   0x3   :  { %s1351_s26 = smov 0   ;;  %s1353_s27 = smov 0  }
   0x4 LB: > { %s1368_s28 = sadd.s32 4294967295, %s1299_s27   ;;  %s1005_s29 = sadd.s32 4294967294, %s1299_s27   ;;  %s1299_s27 = sphi %s1353_s27, %s1561_s27   ;;  %s1295_s26 = sphi %s1351_s26, %s1560_s26   ;;  %s1291_s25 = sphi %s1349_s25, %s1559_s25   ;;  %s1287_s24 = sphi %s1347_s24, %s1558_s24  }
   0x5   : > { %s1372_s30 = sadd.s32 1, %s1299_s27   ;;  %s180_s8 = sadd.s32 1, %s1295_s26 }
   0x6   : > { %s177_s9 = ssub.s32 %s1299_s27, %s1372_s30  ;;  %p190_p0 = scmp.ne.s32.totalorder %s1295_s26, %s1291_s25 }
   0x7   : > { %p178_p1 = scmp.eq.s32.totalorder %s177_s9, 0  ;;  %p191_p2 = scmp.eq.s32.totalorder %s1368_s28, 1 }
   0x8   : > { %p196_p3 = scmp.ne.s32.totalorder %s1291_s25, %s1287_s24  ;;  %p197_p4 = scmp.eq.s32.totalorder %s1005_s29, 1 }
   0x9   : > { %s1383_s10 = scalar_select %p178_p1, %s1295_s26, %s180_s8  }
   0xa   : > { %p1385_p5 = por %p191_p2, %p190_p0  ;;  %p1389_p6 = por %p197_p4, %p196_p3 }
   0xb   : > { %p1006_p7 = scmp.ge.s32.totalorder %s1299_s27, 1  ;;  %p204_p8 = scmp.lt.s32.totalorder %s1299_s27, 3 }
   0xc   : > { %s1549_s11 = scalar_select %p1385_p5, 1, 0 }
   0xd   : > { %s1550_s12 = scalar_select %p1389_p6, 1, 0 }
   0xe   : > { %p1546_p9 = scmp.eq.s32.totalorder %s1368_s28, 0  ;;  %p1396_p10 = pnand %p1006_p7, %p204_p8 }
   0xf   : > { %s1301_s14 = smov [#allocation2]   ;;  %s1205_s19 = scalar_lea.hbm %s1543_s5, 1536 }
  0x10   : > { %s1551_s13 = scalar_select %p1396_p10, 1, 0 }
  0x11   : > { %s228_s15 = sshll.u32 %s1301_s14, 4  ;;  %p1153_p11 = pneg %p1396_p10  ;;  %s229_s15 = int_to_ptr.vmem [resolvable:$true] %s228_s15 }
  0x12   : > { %p1206_p13 = scmp.ne.s32.totalorder %s1543_s5, %s1205_s19  ;;  %p1212_p3 = scmp.lt.u32.totalorder %s1205_s19, %s1543_s5 }
  0x13   : > { %p1404_p12 = pnand %p1546_p9, %p1153_p11 }
  0x15   : > { %p1207_p0 = pneg %p1404_p12 }
  0x17   : > { %p1208_p1 = pnand %p1207_p0, %p1206_p13 }
  0x19   : > { %p1209_p2 = pneg %p1208_p1 }
  0x1b   : > { %p1214_p4 = pnand %p1212_p3, %p1209_p2 }
  0x1d   : > { %1217 = shalt.err (!%p1214_p4)
}
  0x1e   : > { %s1218_s29 = scalar_lea.vmem %s229_s15, 1536  ;;  %p1226_p9 = scmp.lt.s32.totalorder %s229_s15, %s229_s15 }
  0x1f   : > { %p1219_p7 = scmp.ne.s32.totalorder %s229_s15, %s1218_s29  ;;  %p1227_p6 = scmp.lt.s32.totalorder %s1218_s29, %s1218_s29 }
  0x21   : > { %p1221_p8 = pnand %p1219_p7, %p1207_p0  ;;  %p1228_p5 = por %p1227_p6, %p1226_p9 }
  0x23   : > { %p1222_p11 = pneg %p1221_p8 }
  0x25   : > { %p1229_p10 = pnand %p1228_p5, %p1222_p11 }
  0x27   : > { %1232 = shalt.err (!%p1229_p10)
}
  0x28   : > { %s1302_s8 = smov 128   ;;  %s1303_s9 = smov 8  }
  0x29   : > { %1156 = dma.hbm_to_vmem [thread:$0]  (!%p1404_p12), %s1543_s5, 1536, %s229_s15, [#allocation3], %s1302_s8, %s1302_s8, %s1303_s9  }
  0x2a   : > { %p1553_p13 = scmp.ne.s32.totalorder %s1551_s13, 0 }
  0x2b   : > { %p1554_p1 = scmp.eq.s32.totalorder (!%p1553_p13), %s1368_s28, 0 }
  0x2c   : > { %254 = sbr.rel (%p1553_p13) target bundleno = 561 (0x231), region = 48 }
  0x33   : > { %1278 = dma.done.wait (%p1554_p1), [#allocation3], 1536   ;;  %p1555_p0 = pmov %p1554_p1 }
  0x34   : > { %p285_p5 = scmp.lt.s32.totalorder %s1368_s28, 1  ;;  %v290_v0 = vlaneseq  ;;  %vm324_vm0 = vcmask 1043456   ;;  %vm322_vm1 = vcmask 1041408   ;;  %v1013_v10 = vld [vmem:[%s1539_s1 + $0x4] sm:$0xf]  ;;  %vm326_vm2 = vcmask 1045504  }
  0x35   : > { %1280 = vsyncadd (%p1555_p0), [#allocation3], 4294965760  ;;  %v345_v12 = vld [vmem:[%s1539_s1] sm:$0xf]  ;;  %1067 = vmatprep.subr.msk.mxu0 %vm324_vm0, %v1013_v10  ;;  %vm350_vm3 = vcmask 31744   ;;  %vm333_vm4 = vcmask 1040384  }
  0x36   : > { %s286_s18 = scalar_select %p285_p5, %s1368_s28, 1  ;;  %v291_v1 = vshrl.u32 %v290_v0, 7  ;;  %1068 = vmatpush3.msk.msra.mxu0 %vm324_vm0, %v1013_v10  ;;  %v1014_v28 = vld [vmem:[%s1539_s1 + $0x8] sm:$0xf]  ;;  %vm339_vm5 = vcmask 1046528   ;;  %v655_v36 = vld [vmem:[#allocation2 + $0x20] sm:$0xff] }
  0x37   : > { %1072 = vmatprep.subr.msk.mxu0 %vm324_vm0, %v345_v12  ;;  %v656_v37 = vld [vmem:[#allocation2 + $0x28] sm:$0xff]  ;;  %v650_v39 = vld [vmem:[#allocation2] sm:$0xff]  ;;  %v657_v42 = vld [vmem:[#allocation2 + $0x30] sm:$0xff]  ;;  %vm664_vm6 = vcmask 261120   ;;  %s282_s15 = sand.u32 1, %s1291_s25   ;;  %s1039_s29 = sshll.u32 %s1368_s28, 8 }
  0x38   : > { %s1012_s16 = sshll.u32 %s286_s18, 3  ;;  %v292_v2 = vsub.s32 0, %v291_v1  ;;  %v296_v3 = vsub.s32 1, %v291_v1  ;;  %v300_v4 = vsub.s32 2, %v291_v1  ;;  %v304_v5 = vsub.s32 3, %v291_v1  ;;  %v651_v40 = vld [vmem:[#allocation2 + $0x8] sm:$0xff]  ;;  %s1495_s14 = scalar_lea.hbm %s1545_s7, %s1039_s29 }
  0x39   : > { %s288_s19 = scalar_lea.vmem %s1538_s0, %s1012_s16  ;;  %v308_v6 = vsub.s32 4, %v291_v1  ;;  %v312_v7 = vsub.s32 5, %v291_v1  ;;  %v316_v8 = vsub.s32 6, %v291_v1  ;;  %v320_v9 = vsub.s32 7, %v291_v1  ;;  %v658_v43 = vld [vmem:[#allocation2 + $0x38] sm:$0xff]  ;;  %v652_v45 = vld [vmem:[#allocation2 + $0x10] sm:$0xff] }
  0x3a   : > { %v289_v11 = vld [vmem:[%s288_s19] sm:$0xff]  ;;  %v1115_v38 = vpack.c.bf16 %v656_v37, %v655_v36  ;;  %v1123_v41 = vpack.c.bf16 %v651_v40, %v650_v39  ;;  %v1119_v44 = vpack.c.bf16 %v658_v43, %v657_v42  ;;  %v653_v46 = vld [vmem:[#allocation2 + $0x18] sm:$0xff]  ;;  %v661_v49 = vld [vmem:[#allocation2 + $0x48] sm:$0xff]  ;;  %s1011_s19 = sshll.u32 %s282_s15, 4  ;;  %s1497_s17 = scalar_lea.sflag [#allocation4], %s282_s15 }
  0x3b   : > { %v293_v13 = vrot.slane %v289_v11, %v292_v2  ;;  %v297_v14 = vrot.slane %v289_v11, %v296_v3  ;;  %v301_v15 = vrot.slane %v289_v11, %v300_v4  ;;  %v305_v16 = vrot.slane %v289_v11, %v304_v5  ;;  %v660_v48 = vld [vmem:[#allocation2 + $0x40] sm:$0xff]  ;;  %v662_v10 = vld [vmem:[#allocation2 + $0x50] sm:$0xff]  ;;  %s284_s22 = scalar_lea.vmem [#allocation5], %s1011_s19  ;;  %p1556_p9 = scmp.ne.s32.totalorder %s1549_s11, 0 }
  0x3c   : > { %v309_v17 = vrot.slane %v289_v11, %v308_v6  ;;  %v313_v18 = vrot.slane %v289_v11, %v312_v7  ;;  %v317_v19 = vrot.slane %v289_v11, %v316_v8  ;;  %v321_v20 = vrot.slane %v289_v11, %v320_v9  ;;  %1124 = vmatprep.subr.bf16.mxu1 %v1123_v41  ;;  %v1024_v51 = vld [vmem:[%s1540_s2] ss:$0 sm:$0xff]  ;;  %v663_v11 = vld [vmem:[#allocation2 + $0x58] sm:$0xff]  ;;  %s931_s23 = sshll.u32 %s284_s22, 4  ;;  %s1304_s18 = smov [#allocation5]   ;;  %s1490_s23 = int_to_ptr.vmem [resolvable:$true] %s931_s23 }
  0x3d   : > { %v323_v21 = vsel %vm322_vm1, %v293_v13, %v297_v14  ;;  %1126 = vmatpush3.bf16.msra.mxu1 %v1123_v41  ;;  %v1127_v47 = vpack.c.bf16 %v653_v46, %v652_v45  ;;  %v1131_v50 = vpack.c.bf16 %v661_v49, %v660_v48  ;;  %v1025_v62 = vld [vmem:[%s1541_s3] ss:$0 sm:$0xff]  ;;  %s1233_s28 = scalar_lea.vmem %s1490_s23, 256  ;;  %s1237_s16 = sshll.u32 %s1304_s18, 4  ;;  %s1238_s16 = int_to_ptr.vmem [resolvable:$false] %s1237_s16 }
  0x3e   : > { %v325_v22 = vsel %vm324_vm0, %v323_v21, %v301_v15  ;;  %v328_v23 = vsel %vm322_vm1, %v309_v17, %v313_v18  ;;  %v1026_v2 = vld [vmem:[%s1542_s4] ss:$0 sm:$0xff]  ;;  %v1135_v17 = vpack.c.bf16 %v663_v11, %v662_v10  ;;  %p1234_p6 = scmp.ne.s32.totalorder %s1490_s23, %s1233_s28  ;;  %s1239_s13 = scalar_lea.vmem %s1238_s16, 512 }
  0x3f   : > { %v327_v24 = vsel %vm326_vm2, %v325_v22, %v305_v16  ;;  %v329_v25 = vsel %vm324_vm0, %v328_v23, %v317_v19  ;;  %1128 = vmatprep.subr.bf16.mxu1 %v1127_v47  ;;  %v1033_v22 = vld [vmem:[%s1544_s6] ss:$0 sm:$0xff]  ;;  %p1240_p2 = scmp.lt.s32.totalorder %s1490_s23, %s1238_s16  ;;  %p1241_p3 = scmp.lt.s32.totalorder %s1239_s13, %s1233_s28 }
  0x40   : > { %v334_v26 = vrot.slane %v327_v24, 7  ;;  %1069 = vmatprep.mubr.msk.f32.mxu0 %vm350_vm3, %v327_v24  ;;  %v330_v27 = vsel %vm326_vm2, %v329_v25, %v321_v20  ;;  %v340_v31 = vrot.slane %v327_v24, 1  ;;  %p1235_p10 = pnand %p1234_p6, %p1556_p9 }
  0x41   : > { %1070 = vmatmul.mubr.msk.f32.vlgmr.msra.gmra.mrb[0].mxu0 %vm350_vm3, %v330_v27  ;;  %v335_v29 = vrot.slane %v330_v27, 7  ;;  %v341_v32 = vrot.slane %v330_v27, 1  ;;  %1130 = vmatpush3.bf16.msra.mxu1 %v1127_v47  ;;  %p1242_p4 = por %p1241_p3, %p1240_p2 }
  0x42   : > { %1073 = vmatpush3.msk.msra.mxu0 %vm324_vm0, %v345_v12  ;;  %v338_v30 = vsel %vm333_vm4, 0.0, %v334_v26  ;;  %1132 = vmatprep.subr.bf16.mxu1 %v1131_v50  ;;  %p1236_p12 = pneg %p1235_p10 }
  0x43   : > { %1074 = vmatprep.mubr.msk.f32.mxu0 %vm350_vm3, %v338_v30  ;;  %1077 = vmatprep.subr.msk.mxu0 %vm324_vm0, %v1014_v28  ;;  %v336_v33 = vsel %vm333_vm4, %v334_v26, %v335_v29  ;;  %v342_v34 = vsel %vm339_vm5, %v340_v31, %v341_v32  ;;  %v344_v35 = vsel %vm339_vm5, %v341_v32, 0.0 }
  0x44   : > { %p1243_p7 = pnand %p1242_p4, %p1236_p12 }
  0x49   : > { %1075 = vmatmul.mubr.msk.f32.vlgmr.msra.gmra.mrb[0].mxu0 %vm350_vm3, %v336_v33 }
  0x4a   : > { %1078 = vmatpush3.msk.msra.mxu0 %vm324_vm0, %v1014_v28  ;;  %1079 = vmatprep.mubr.msk.f32.mxu0 %vm350_vm3, %v342_v34 }
  0x4b   : > { %1116 = vmatprep.subr.bf16.mxu0 %v1115_v38 }
  0x51   : > { %1080 = vmatmul.mubr.msk.f32.vlgmr.msra.gmra.mrb[0].mxu0 %vm350_vm3, %v344_v35 }
  0x52   : > { %1118 = vmatpush3.bf16.msra.mxu0 %v1115_v38 }
  0x53   : > { %1120 = vmatprep.subr.bf16.mxu0 %v1119_v44 }
  0x56   : > { %1122 = vmatpush3.bf16.msra.mxu0 %v1119_v44 }
 0x124   : > { %v1081_v52 = vpop.f32.mrb[0].mxu0 }
 0x125   : > { %v609_v53 = vadd.f32 %v1081_v52, %v1024_v51  ;;  %v590_v54 = vpop.f32.mrb[1].mxu0 }
 0x126   : > { %v608_v55 = vadd.f32 %v1024_v51, %v590_v54 }
 0x127   : > { %v613_v56 = vmul.f32 0.70710677, %v609_v53  ;;  %v611_v60 = vmul.f32 0.5, %v609_v53 }
 0x128   : > { %v612_v57 = vmul.f32 0.70710677, %v608_v55  ;;  %v610_v63 = vmul.f32 0.5, %v608_v55 }
 0x129   : > { %1201 = verf.f32 %v613_v56 }
 0x12a   : > { %1203 = verf.f32 %v612_v57 }
 0x133   : > { %v1202_v58 = vpop.eup %1201 }
 0x134   : > { %v1204_v59 = vpop.eup %1203  ;;  %v617_v61 = vadd.f32 1.0, %v1202_v58 }
 0x135   : > { %v616_v0 = vadd.f32 1.0, %v1204_v59 }
 0x136   : > { %v619_v1 = vmul.f32 %v617_v61, %v611_v60 }
 0x137   : > { %v618_v3 = vmul.f32 %v616_v0, %v610_v63 }
 0x138   : > { %v628_v4 = vmul.f32 %v1025_v62, %v619_v1 }
 0x139   : > { %v627_v5 = vmul.f32 %v1025_v62, %v618_v3 }
 0x13a   : > { %v637_v6 = vadd.f32 %v1026_v2, %v628_v4 }
 0x13b   : > { %v636_v7 = vadd.f32 %v1026_v2, %v627_v5 }
 0x13c   : > { %v641_v8 = vrot.slane %v637_v6, 7  ;;  %v646_v9 = vrot.slane %v637_v6, 1 }
 0x13d   : > { %1090 = vmatprep.mubr.msk.f32.mxu0 %vm664_vm6, %v636_v7  ;;  %v640_v12 = vrot.slane %v636_v7, 7  ;;  %v645_v13 = vrot.slane %v636_v7, 1 }
 0x13e   : > { %1091 = vmatmul.mubr.msk.f32.vlgmr.msra.gmra.mrb[2].mxu0 %vm664_vm6, %v637_v6  ;;  %v649_v18 = vsel %vm339_vm5, %v646_v9, 0.0 }
 0x13f   : > { %v644_v14 = vsel %vm333_vm4, 0.0, %v640_v12  ;;  %v642_v15 = vsel %vm333_vm4, %v640_v12, %v641_v8  ;;  %v647_v16 = vsel %vm339_vm5, %v645_v13, %v646_v9 }
 0x140   : > { %1101 = vmatprep.mubr.msk.f32.mxu1 %vm664_vm6, %v644_v14 }
 0x141   : > { %1102 = vmatmul.mubr.msk.f32.vlgmr.msra.gmra.mrb[0].mxu1 %vm664_vm6, %v642_v15 }
 0x142   : > { %1134 = vmatpush3.bf16.msra.mxu1 %v1131_v50  ;;  %1112 = vmatprep.mubr.msk.f32.mxu1 %vm664_vm6, %v647_v16 }
 0x143   : > { %1136 = vmatprep.subr.bf16.mxu1 %v1135_v17 }
 0x146   : > { %1138 = vmatpush3.bf16.msra.mxu1 %v1135_v17 }
 0x149   : > { %1113 = vmatmul.mubr.msk.f32.vlgmr.msra.gmra.mrb[0].mxu1 %vm664_vm6, %v649_v18 }
 0x211   : > { %v1092_v19 = vpop.f32.mrb[2].mxu0 }
 0x212   : > { %v735_v20 = vpop.f32.mrb[3].mxu0 }
 0x21c   : > { %v1114_v21 = vpop.f32.mrb[0].mxu1 }
 0x21d   : > { %v1139_v23 = vadd.f32 %v1114_v21, %v1092_v19  ;;  %v895_v24 = vpop.f32.mrb[1].mxu1 }
 0x21e   : > { %v1140_v25 = vadd.f32 %v895_v24, %v735_v20 }
 0x21f   : > { %v914_v26 = vadd.f32 %v1139_v23, %v1033_v22 }
 0x220   : > { %v913_v27 = vadd.f32 %v1140_v25, %v1033_v22 }
 0x221   : > { %916 = vst [vmem:[%s284_s22 + $0x8] sm:$0xff] %v914_v26 }
 0x222   : > { %915 = vst [vmem:[%s284_s22] sm:$0xff] %v913_v27 }
 0x223   : > { %1246 = shalt.err (!%p1243_p7)
}
 0x224   : > { %s1247_s15 = scalar_lea.hbm %s1495_s14, 256  ;;  %s1251_s21 = scalar_lea.hbm %s1545_s7, 512 }
 0x225   : > { %p1248_p8 = scmp.ne.s32.totalorder %s1495_s14, %s1247_s15  ;;  %p1252_p1 = scmp.lt.u32.totalorder %s1495_s14, %s1545_s7 }
 0x226   : > { %p1253_p0 = scmp.lt.u32.totalorder %s1251_s21, %s1247_s15  ;;  %p1255_p6 = scmp.lt.u32.totalorder %s1247_s15, %s1495_s14 }
 0x227   : > { %p1249_p11 = pnand %p1248_p8, %p1556_p9 }
 0x228   : > { %p1254_p5 = por %p1253_p0, %p1252_p1 }
 0x229   : > { %p1250_p13 = pneg %p1249_p11 }
 0x22a   : > { %p1256_p10 = por %p1255_p6, %p1254_p5 }
 0x22c   : > { %p1257_p12 = pnand %p1256_p10, %p1250_p13 }
 0x22e   : > { %1260 = shalt.err (!%p1257_p12)
}
 0x22f   : > { %s1305_s8 = smov 128   ;;  %s1306_s9 = smov 8  }
 0x230   : > { %1151 = dma.vmem_to_hbm [thread:$0]  (%p1556_p9), %s1490_s23, 256, %s1495_s14, %s1497_s17, %s1305_s8, %s1305_s8, %s1306_s9  }
 0x231 PF: > { %p1163_p2 = scmp.ge.s32.totalorder %s1299_s27, 2  ;;  %s946_s28 = sand.u32 1, %s1287_s24  }
 0x232   : > { %p1557_p3 = scmp.ne.s32.totalorder %s1550_s12, 0  ;;  %s947_s18 = scalar_lea.sflag [#allocation4], %s946_s28 }
 0x234   : > { %p1158_p4 = pnand %p1163_p2, %p1557_p3 }
 0x236   : > { %1282 = dma.done.wait (!%p1158_p4), %s947_s18, 256  }
 0x237   : > { %1284 = vsyncadd (!%p1158_p4), %s947_s18, 4294967040  ;;  %p18_p7 = scmp.ge.s32.totalorder %s1372_s30, 4   ;;  %s1558_s24 = smov %s1291_s25 }
 0x238   : > { %s1559_s25 = smov %s1295_s26  ;;  %s1560_s26 = smov %s1383_s10 }
 0x239   : > { %s1561_s27 = smov %s1372_s30  ;;  %20 = sbr.rel (!%p18_p7) target bundleno = 4 (0x4), region = 92 }
 0x240   :  { %952 = vsyncpa [#allocation3], 1 }
 0x241   :  { %954 = vsyncpa [#allocation3 + $0x1], 1 }
 0x242   :  { %955 = vsyncpa [#allocation4], 1 }
 0x243   :  { %957 = vsyncpa [#allocation4 + $0x1], 1 }

</bundles_post_ra>
